<compile_context>
chip_gen: v6e
topology: v6e:2x2x1
jax: 0.10.0
libtpu: 0.0.40
codegen_flags: <defaults>
</compile_context>

<pallas_src>
import functools

import jax
import jax.numpy as jnp
from jax.experimental import pallas as pl
from jax.experimental.pallas import tpu as pltpu


def _critic_kernel(state_ref, action_ref, w1_ref, w2x_ref, w2a_ref, packed_ref,
                   out_ref, *, fc1_size, fc2_size):
    x = state_ref[...]            # (B, S)  f32
    a = action_ref[...]           # (B, A)  f32

    b1 = packed_ref[0:1, :fc1_size]       # (1, fc1)  f32
    b2 = packed_ref[1:2, :fc2_size]       # (1, fc2)  f32
    w3t = packed_ref[2:3, :fc2_size]      # (1, fc2)  f32 == W3 transposed
    b3 = packed_ref[3:4, 0:1]             # (1, 1)    f32

    def mm(lhs, w_ref):
        # MXU matmul. Weights are already stored in their matmul dtype (bf16 on
        # the fast path); only the small lhs activation tile is cast in-kernel.
        # Accumulation stays f32.
        return jnp.dot(lhs.astype(w_ref.dtype), w_ref[...],
                       preferred_element_type=jnp.float32)

    # fc1 + relu (elementwise math stays f32 on the VPU).
    h1 = jnp.maximum(mm(x, w1_ref) + b1, 0.0)

    # BatchNorm1d, training mode (gamma=1, beta=0, eps=1e-5), biased variance.
    # Centered form: mean first, then var of (h1 - mean); the centered diff is
    # reused for the normalization (numerically safer than E[x^2]-E[x]^2 and no
    # extra subtract).
    inv_b = jnp.float32(1.0 / h1.shape[0])
    mean = jnp.sum(h1, axis=0, keepdims=True) * inv_b
    diff = h1 - mean
    var = jnp.sum(diff * diff, axis=0, keepdims=True) * inv_b
    h1n = diff * jax.lax.rsqrt(var + 1e-5)

    # fc2 on concat([h1n, action], 1) expressed as a split matmul, then relu.
    h2 = jnp.maximum(mm(h1n, w2x_ref) + mm(a, w2a_ref) + b2, 0.0)

    # fc3 (out_features = 1): VPU multiply + lane reduction instead of an MXU
    # matmul whose result would waste 127/128 output lanes. f32 throughout.
    out_ref[...] = jnp.sum(h2 * w3t, axis=-1, keepdims=True) + b3


def _padded_vmem_bytes(shape, dtype):
    """Bytes for a tensor once padded to native TPU tiles for its dtype."""
    itemsize = jnp.dtype(dtype).itemsize
    if len(shape) == 0:
        r, c = 1, 1
    elif len(shape) == 1:
        r, c = 1, shape[0]
    else:
        r, c = shape[-2], shape[-1]
    sublanes = 8 * max(4 // itemsize, 1)      # sub-32-bit dtypes pack along sublanes
    r_pad = -(-r // sublanes) * sublanes
    c_pad = -(-c // 128) * 128
    lead = 1
    for d in shape[:-2]:
        lead *= d
    return lead * r_pad * c_pad * itemsize


def critic_forward(state, action, params):
    B, S = state.shape
    A = action.shape[1]
    if B < 2:
        # Matches PyTorch: BatchNorm1d in training mode requires > 1 sample.
        raise ValueError("Critic forward (training-mode BatchNorm) needs B >= 2")

    w1, w2x, w2a, packed = params
    fc1_size = w1.shape[1]
    fc2_size = w2x.shape[1]

    # Tight scoped-VMEM budget: actual padded live set (inputs + output +
    # activation temps), x2 for buffering plus 1 MiB compiler scratch headroom,
    # capped at 48 MiB to keep margin on v7x (64 MiB physical per TensorCore).
    live = sum(_padded_vmem_bytes(t.shape, t.dtype)
               for t in (state, action, w1, w2x, w2a, packed))
    live += _padded_vmem_bytes((B, 1), jnp.float32)                         # output
    live += 6 * _padded_vmem_bytes((B, max(fc1_size, fc2_size)), jnp.float32)  # h1/diff/h1n/h2/temps
    vmem_limit = int(min(2 * live + (1 << 20), 48 << 20))

    # Advisory cost so XLA schedules surrounding HLOs around this tiny call.
    matmul_flops = 2 * B * (S * fc1_size + fc1_size * fc2_size + A * fc2_size + fc2_size)
    cost = pl.CostEstimate(
        flops=matmul_flops + 8 * B * fc1_size,       # + BN / relu / fc3 VPU work
        transcendentals=fc1_size,                    # rsqrt over (1, fc1)
        bytes_accessed=int(sum(t.size * jnp.dtype(t.dtype).itemsize
                               for t in (state, action, w1, w2x, w2a, packed))
                           + B * 4),
    )

    kernel = functools.partial(_critic_kernel, fc1_size=fc1_size, fc2_size=fc2_size)
    vmem = pl.BlockSpec(memory_space=pltpu.MemorySpace.VMEM)
    return pl.pallas_call(
        kernel,
        out_shape=jax.ShapeDtypeStruct((B, 1), jnp.float32),
        in_specs=[vmem] * 6,
        out_specs=vmem,
        compiler_params=pltpu.CompilerParams(vmem_limit_bytes=vmem_limit),
        cost_estimate=cost,
    )(state, action, w1, w2x, w2a, packed)


def init_params(key, state_size, action_size, fc1_size=128, fc2_size=128):
    """Deterministic f32 init mirroring the PyTorch module's __init__ (shapes + ranges)."""
    ks = jax.random.split(key, 6)
    lim1 = 1.0 / (fc1_size ** 0.5)          # init_interval uses weight.size()[0] = out_features
    lim2 = 1.0 / (fc2_size ** 0.5)
    bl1 = 1.0 / (state_size ** 0.5)         # torch default bias init: 1/sqrt(in_features)
    bl2 = 1.0 / ((fc1_size + action_size) ** 0.5)
    bl3 = 1.0 / (fc2_size ** 0.5)

    w1 = jax.random.uniform(ks[0], (state_size, fc1_size), jnp.float32, -lim1, lim1)
    b1 = jax.random.uniform(ks[1], (fc1_size,), jnp.float32, -bl1, bl1)
    w2 = jax.random.uniform(ks[2], (fc1_size + action_size, fc2_size), jnp.float32, -lim2, lim2)
    b2 = jax.random.uniform(ks[3], (fc2_size,), jnp.float32, -bl2, bl2)
    w3 = jax.random.uniform(ks[4], (fc2_size,), jnp.float32, -0.003, 0.003)   # W3 row (transposed)
    b3 = jax.random.uniform(ks[5], (), jnp.float32, -bl3, bl3)

    # Pre-split fc2 weight (concat -> split matmul).
    w2x, w2a = w2[:fc1_size], w2[fc1_size:]

    # Pack biases + fc3 weight row + fc3 bias into a single dense f32 slab.
    width = max(fc1_size, fc2_size)
    packed = jnp.zeros((4, width), jnp.float32)
    packed = packed.at[0, :fc1_size].set(b1)
    packed = packed.at[1, :fc2_size].set(b2)
    packed = packed.at[2, :fc2_size].set(w3)
    packed = packed.at[3, 0].set(b3)
    return (w1, w2x, w2a, packed)


def cast_weights(params, weight_dtype):
    """Pre-cast the matmul weights for HBM storage (bf16 fast path); biases/BN stay f32."""
    w1, w2x, w2a, packed = params
    return (w1.astype(weight_dtype), w2x.astype(weight_dtype),
            w2a.astype(weight_dtype), packed)


def _reference(state, action, params):
    """Pure-JAX f32 reference reproducing the PyTorch forward (training-mode BN)."""
    w1, w2x, w2a, packed = params
    fc1_size = w1.shape[1]
    fc2_size = w2x.shape[1]
    b1 = packed[0, :fc1_size]
    b2 = packed[1, :fc2_size]
    w3 = packed[2, :fc2_size].reshape(fc2_size, 1)
    b3 = packed[3, 0]

    h1 = jnp.maximum(state @ w1.astype(jnp.float32) + b1, 0.0)
    mean = jnp.mean(h1, axis=0, keepdims=True)
    var = jnp.mean((h1 - mean) ** 2, axis=0, keepdims=True)
    h1n = (h1 - mean) / jnp.sqrt(var + 1e-5)
    x = jnp.concatenate([h1n, action], axis=1)
    w2 = jnp.concatenate([w2x.astype(jnp.float32), w2a.astype(jnp.float32)], axis=0)
    h2 = jnp.maximum(x @ w2 + b2, 0.0)
    return h2 @ w3 + b3


if __name__ == "__main__":
    state_size, action_size = 32, 8
    key = jax.random.PRNGKey(0)
    k_s8, k_a8, k_s10, k_a10, k_params = jax.random.split(key, 5)

    params_f32 = init_params(k_params, state_size, action_size)
    params_bf16 = cast_weights(params_f32, jnp.bfloat16)   # HBM bf16 weight storage

    # --- B = 8, f32-weight path: tight agreement with the f32 reference ------
    state8 = jax.random.normal(k_s8, (8, state_size), jnp.float32)
    action8 = jax.random.normal(k_a8, (8, action_size), jnp.float32)
    ref8 = _reference(state8, action8, params_f32)

    out_f32 = jax.block_until_ready(critic_forward(state8, action8, params_f32))
    assert out_f32.shape == (8, 1), out_f32.shape
    assert jnp.allclose(out_f32, ref8, atol=1e-4, rtol=1e-4), (out_f32, ref8)

    # --- B = 8, bf16 HBM-weight fast path: deliberately looser tolerance -----
    out_bf16 = jax.block_until_ready(critic_forward(state8, action8, params_bf16))
    assert out_bf16.shape == (8, 1), out_bf16.shape
    assert jnp.allclose(out_bf16, ref8, atol=2e-2, rtol=2e-2), (out_bf16, ref8)

    # --- B = 10 (not a multiple of 8): BN stats must ignore sublane padding --
    state10 = jax.random.normal(k_s10, (10, state_size), jnp.float32)
    action10 = jax.random.normal(k_a10, (10, action_size), jnp.float32)
    ref10 = _reference(state10, action10, params_f32)
    out10 = jax.block_until_ready(critic_forward(state10, action10, params_bf16))
    assert out10.shape == (10, 1), out10.shape
    assert jnp.allclose(out10, ref10, atol=2e-2, rtol=2e-2), (out10, ref10)

    print("KERNEL_OK")
</pallas_src>

<mosaic_0001>
module attributes {stable_mosaic.version = 11 : i64} {
  func.func @_critic_kernel(%arg0: memref<8x32xf32, #tpu.memory_space<vmem>>, %arg1: memref<8x8xf32, #tpu.memory_space<vmem>>, %arg2: memref<32x128xf32, #tpu.memory_space<vmem>>, %arg3: memref<128x128xf32, #tpu.memory_space<vmem>>, %arg4: memref<8x128xf32, #tpu.memory_space<vmem>>, %arg5: memref<4x128xf32, #tpu.memory_space<vmem>>, %arg6: memref<8x1xf32, #tpu.memory_space<vmem>>) attributes {dimension_semantics = [], scalar_prefetch = 0 : i64, scratch_operands = 0 : i64, tpu.core_type = #tpu.core_type<tc>} {
    %c0 = arith.constant 0 : index
    %c0_0 = arith.constant 0 : index
    %0 = vector.load %arg0[%c0, %c0_0] : memref<8x32xf32, #tpu.memory_space<vmem>>, vector<8x32xf32>
    %c0_1 = arith.constant 0 : index
    %c0_2 = arith.constant 0 : index
    %1 = vector.load %arg1[%c0_1, %c0_2] : memref<8x8xf32, #tpu.memory_space<vmem>>, vector<8x8xf32>
    %c0_3 = arith.constant 0 : index
    %c0_4 = arith.constant 0 : index
    %2 = vector.load %arg5[%c0_3, %c0_4] : memref<4x128xf32, #tpu.memory_space<vmem>>, vector<1x128xf32>
    %c1 = arith.constant 1 : index
    %c0_5 = arith.constant 0 : index
    %3 = vector.load %arg5[%c1, %c0_5] : memref<4x128xf32, #tpu.memory_space<vmem>>, vector<1x128xf32>
    %c2 = arith.constant 2 : index
    %c0_6 = arith.constant 0 : index
    %4 = vector.load %arg5[%c2, %c0_6] : memref<4x128xf32, #tpu.memory_space<vmem>>, vector<1x128xf32>
    %c3 = arith.constant 3 : index
    %c0_7 = arith.constant 0 : index
    %5 = vector.load %arg5[%c3, %c0_7] : memref<4x128xf32, #tpu.memory_space<vmem>>, vector<1x1xf32>
    %c0_8 = arith.constant 0 : index
    %c0_9 = arith.constant 0 : index
    %6 = vector.load %arg2[%c0_8, %c0_9] : memref<32x128xf32, #tpu.memory_space<vmem>>, vector<32x128xf32>
    %cst = arith.constant dense<0.000000e+00> : vector<8x128xf32>
    %7 = tpu.matmul %0, %6, %cst {dimension_numbers = #tpu.dot_dimension_numbers<[1], [0], [0], [1], [0, 0, 1, 1], [], []>} : vector<8x32xf32>, vector<32x128xf32>, vector<8x128xf32> -> vector<8x128xf32>
    %8 = vector.broadcast %2 : vector<1x128xf32> to vector<8x128xf32>
    %9 = arith.addf %7, %8 : vector<8x128xf32>
    %cst_10 = arith.constant 0.000000e+00 : f32
    %10 = vector.broadcast %cst_10 : f32 to vector<8x128xf32>
    %11 = arith.maximumf %9, %10 : vector<8x128xf32>
    %cst_11 = arith.constant dense<0.000000e+00> : vector<128xf32>
    %12 = vector.multi_reduction <add>, %11, %cst_11 [0] : vector<8x128xf32> to vector<128xf32>
    %13 = vector.shape_cast %12 : vector<128xf32> to vector<1x128xf32>
    %cst_12 = arith.constant 1.250000e-01 : f32
    %14 = vector.broadcast %cst_12 : f32 to vector<1x128xf32>
    %15 = arith.mulf %13, %14 : vector<1x128xf32>
    %16 = vector.broadcast %15 : vector<1x128xf32> to vector<8x128xf32>
    %17 = arith.subf %11, %16 : vector<8x128xf32>
    %18 = arith.mulf %17, %17 : vector<8x128xf32>
    %cst_13 = arith.constant dense<0.000000e+00> : vector<128xf32>
    %19 = vector.multi_reduction <add>, %18, %cst_13 [0] : vector<8x128xf32> to vector<128xf32>
    %20 = vector.shape_cast %19 : vector<128xf32> to vector<1x128xf32>
    %cst_14 = arith.constant 1.250000e-01 : f32
    %21 = vector.broadcast %cst_14 : f32 to vector<1x128xf32>
    %22 = arith.mulf %20, %21 : vector<1x128xf32>
    %cst_15 = arith.constant 9.99999974E-6 : f32
    %23 = vector.broadcast %cst_15 : f32 to vector<1x128xf32>
    %24 = arith.addf %22, %23 : vector<1x128xf32>
    %25 = math.rsqrt %24 : vector<1x128xf32>
    %26 = vector.broadcast %25 : vector<1x128xf32> to vector<8x128xf32>
    %27 = arith.mulf %17, %26 : vector<8x128xf32>
    %c0_16 = arith.constant 0 : index
    %c0_17 = arith.constant 0 : index
    %28 = vector.load %arg3[%c0_16, %c0_17] : memref<128x128xf32, #tpu.memory_space<vmem>>, vector<128x128xf32>
    %cst_18 = arith.constant dense<0.000000e+00> : vector<8x128xf32>
    %29 = tpu.matmul %27, %28, %cst_18 {dimension_numbers = #tpu.dot_dimension_numbers<[1], [0], [0], [1], [0, 0, 1, 1], [], []>} : vector<8x128xf32>, vector<128x128xf32>, vector<8x128xf32> -> vector<8x128xf32>
    %c0_19 = arith.constant 0 : index
    %c0_20 = arith.constant 0 : index
    %30 = vector.load %arg4[%c0_19, %c0_20] : memref<8x128xf32, #tpu.memory_space<vmem>>, vector<8x128xf32>
    %cst_21 = arith.constant dense<0.000000e+00> : vector<8x128xf32>
    %31 = tpu.matmul %1, %30, %cst_21 {dimension_numbers = #tpu.dot_dimension_numbers<[1], [0], [0], [1], [0, 0, 1, 1], [], []>} : vector<8x8xf32>, vector<8x128xf32>, vector<8x128xf32> -> vector<8x128xf32>
    %32 = arith.addf %29, %31 : vector<8x128xf32>
    %33 = vector.broadcast %3 : vector<1x128xf32> to vector<8x128xf32>
    %34 = arith.addf %32, %33 : vector<8x128xf32>
    %cst_22 = arith.constant 0.000000e+00 : f32
    %35 = vector.broadcast %cst_22 : f32 to vector<8x128xf32>
    %36 = arith.maximumf %34, %35 : vector<8x128xf32>
    %37 = vector.broadcast %4 : vector<1x128xf32> to vector<8x128xf32>
    %38 = arith.mulf %36, %37 : vector<8x128xf32>
    %cst_23 = arith.constant dense<0.000000e+00> : vector<8xf32>
    %39 = vector.multi_reduction <add>, %38, %cst_23 [1] : vector<8x128xf32> to vector<8xf32>
    %40 = vector.shape_cast %39 : vector<8xf32> to vector<8x1xf32>
    %41 = vector.broadcast %5 : vector<1x1xf32> to vector<8x1xf32>
    %42 = arith.addf %40, %41 : vector<8x1xf32>
    %c0_24 = arith.constant 0 : index
    %c0_25 = arith.constant 0 : index
    %43 = vector.load %arg6[%c0_24, %c0_25] : memref<8x1xf32, #tpu.memory_space<vmem>>, vector<8x1xf32>
    tpu.vector_store %arg6[%c0_24, %c0_25], %42 {strides = array<i32>} : memref<8x1xf32, #tpu.memory_space<vmem>>, vector<8x1xf32>,
    return
  }
}

</mosaic_0001>

<bundles_post_ra>
// kernel: tpu_custom_call.1
= control target key start
LH: loop header
LB: loop body
LE: loop exit
PB: predicated region body
PF: predicated region fallthrough
CT: control target
= control target key end

     0   :  { %11 = vsyncpa [#allocation3], 0  ;;  %s680_s0 = inlined_call_operand.hbm [shape: f32[8,32], index: 0, kind: input, shape index: {}]   ;;  %s681_s1 = inlined_call_operand.hbm [shape: f32[8,8], index: 1, kind: input, shape index: {}]   ;;  %s682_s2 = inlined_call_operand.hbm [shape: f32[32,128], index: 2, kind: input, shape index: {}]   ;;  %s683_s3 = inlined_call_operand.hbm [shape: f32[128,128], index: 3, kind: input, shape index: {}]   ;;  %s684_s4 = inlined_call_operand.hbm [shape: f32[8,128], index: 4, kind: input, shape index: {}]   ;;  %s685_s5 = inlined_call_operand.vmem [shape: f32[4,128], index: 5, kind: input, shape index: {}]   ;;  %s686_s6 = inlined_call_operand.vmem [shape: f32[8,1], index: 6, kind: output, shape index: {}]  }
   0x1   :  { %12 = vsyncpa [#allocation5], 0 }
   0x2   :  { %13 = vsyncpa [#allocation8], 0  ;;  %s579_s21 = smov [#allocation4]  }
   0x3   :  { %s30_s22 = sshll.u32 %s579_s21, 4  ;;  %s31_s22 = int_to_ptr.vmem [resolvable:$true] %s30_s22 }
   0x4   :  { %s481_s23 = scalar_lea.vmem %s31_s22, 128  ;;  %p486_p1 = scmp.lt.s32.totalorder %s31_s22, %s31_s22 }
   0x5   :  { %p482_p0 = scmp.ne.s32.totalorder %s31_s22, %s481_s23  ;;  %p487_p2 = scmp.lt.s32.totalorder %s481_s23, %s481_s23 }
   0x7   :  { %p488_p3 = por %p487_p2, %p486_p1 }
   0x9   :  { %p489_p4 = pnand %p488_p3, %p482_p0 }
   0xb   :  { %492 = shalt.err (!%p489_p4)
}
   0xc   :  { %33 = dma.hbm_to_vmem [thread:$0]  %s681_s1, 128, %s31_s22, [#allocation5]  }
   0xd   :  { %s580_s26 = smov [#allocation7]   ;;  %s581_s28 = smov [#allocation2]  }
   0xe   :  { %s51_s27 = sshll.u32 %s580_s26, 4  ;;  %s20_s29 = sshll.u32 %s581_s28, 4  ;;  %s52_s27 = int_to_ptr.vmem [resolvable:$true] %s51_s27  ;;  %s21_s29 = int_to_ptr.vmem [resolvable:$true] %s20_s29 }
   0xf   :  { %s501_s30 = scalar_lea.vmem %s52_s27, 2048  ;;  %p506_p6 = scmp.lt.s32.totalorder %s52_s27, %s52_s27 }
  0x10   :  { %p502_p5 = scmp.ne.s32.totalorder %s52_s27, %s501_s30  ;;  %p507_p7 = scmp.lt.s32.totalorder %s501_s30, %s501_s30 }
  0x12   :  { %p508_p8 = por %p507_p7, %p506_p6 }
  0x14   :  { %p509_p9 = pnand %p508_p8, %p502_p5 }
  0x16   :  { %512 = shalt.err (!%p509_p9)
}
  0x17   :  { %s582_s7 = smov 128   ;;  %s583_s8 = smov 8  }
  0x18   :  { %57 = dma.hbm_to_vmem [thread:$0]  %s683_s3, 2048, %s52_s27, [#allocation8], %s582_s7, %s582_s7, %s583_s8  }
  0x19   :  { %s521_s1 = scalar_lea.vmem %s21_s29, 128  ;;  %p526_p11 = scmp.lt.s32.totalorder %s21_s29, %s21_s29 }
  0x1a   :  { %p522_p10 = scmp.ne.s32.totalorder %s21_s29, %s521_s1  ;;  %p527_p12 = scmp.lt.s32.totalorder %s521_s1, %s521_s1 }
  0x1c   :  { %p528_p13 = por %p527_p12, %p526_p11 }
  0x1e   :  { %p529_p0 = pnand %p528_p13, %p522_p10 }
  0x20   :  { %532 = shalt.err (!%p529_p0)
}
  0x21   :  { %23 = dma.hbm_to_vmem [thread:$0]  %s680_s0, 128, %s21_s29, [#allocation3]  }
  0x22   :  { %s584_s13 = smov [#allocation6]   ;;  %s585_s15 = smov [#allocation9]  }
  0x23   :  { %s39_s14 = sshll.u32 %s584_s13, 4  ;;  %s64_s16 = sshll.u32 %s585_s15, 4  ;;  %s40_s14 = int_to_ptr.vmem [resolvable:$true] %s39_s14  ;;  %s65_s16 = int_to_ptr.vmem [resolvable:$true] %s64_s16 }
  0x24   :  { %s541_s17 = scalar_lea.vmem %s40_s14, 512  ;;  %p546_p2 = scmp.lt.s32.totalorder %s40_s14, %s40_s14 }
  0x25   :  { %p542_p1 = scmp.ne.s32.totalorder %s40_s14, %s541_s17  ;;  %p547_p3 = scmp.lt.s32.totalorder %s541_s17, %s541_s17 }
  0x27   :  { %p548_p4 = por %p547_p3, %p546_p2 }
  0x29   :  { %p549_p5 = pnand %p548_p4, %p542_p1 }
  0x2b   :  { %552 = shalt.err (!%p549_p5)
}
  0x2c   :  { %45 = dma.hbm_to_vmem [thread:$0]  %s682_s2, 512, %s40_s14, [#allocation5], %s582_s7, %s582_s7, %s583_s8  }
  0x2d   :  { %s561_s19 = scalar_lea.vmem %s65_s16, 128  ;;  %p566_p7 = scmp.lt.s32.totalorder %s65_s16, %s65_s16 }
  0x2e   :  { %p562_p6 = scmp.ne.s32.totalorder %s65_s16, %s561_s19  ;;  %p567_p8 = scmp.lt.s32.totalorder %s561_s19, %s561_s19 }
  0x30   :  { %p568_p9 = por %p567_p8, %p566_p7 }
  0x32   :  { %p569_p10 = pnand %p568_p9, %p562_p6 }
  0x34   :  { %572 = shalt.err (!%p569_p10)
}
  0x35   :  { %67 = dma.hbm_to_vmem [thread:$0]  %s684_s4, 128, %s65_s16, [#allocation8]  }
  0x36   :  { %573 = dma.done.wait [#allocation3], 128  }
  0x37   :  { %574 = vsyncadd [#allocation3], 4294967168 }
  0x38   :  { %575 = dma.done.wait [#allocation5], 640  }
  0x39   :  { %576 = vsyncadd [#allocation5], 4294966656 }
  0x3a   :  { %577 = dma.done.wait [#allocation8], 2176  }
  0x3b   :  { %578 = vsyncadd [#allocation8], 4294965120  ;;  %v586_v0 = vmov 0.0   ;;  %vm587_vm0 = vmmov 0   ;;  %v94_v1 = vld [vmem:[#allocation6 + $0x18] sm:$0xff]  ;;  %v93_v2 = vld [vmem:[#allocation6 + $0x10] sm:$0xff] }
  0x3c   :  { %411 = vmatprep.subr.mxu0 %v586_v0  ;;  %419 = vmatprep.mubr.msk.f32.mxu0 %vm587_vm0, %v586_v0  ;;  %v92_v3 = vld [vmem:[#allocation6 + $0x8] sm:$0xff]  ;;  %v91_v4 = vld [vmem:[#allocation6] sm:$0xff]  ;;  %v85_v5 = vld [vmem:[#allocation2] sm:$0xff]  ;;  %vm99_vm1 = vcmask 261120   ;;  %vm210_vm2 = vcmask 64512   ;;  %vm372_vm3 = vcmask 7168  }
  0x3d   :  { %427 = vmatprep.subr.mxu1 %v586_v0  ;;  %459 = vmatprep.mubr.msk.f32.mxu1 %vm587_vm0, %v586_v0  ;;  %v208_v6 = vld [vmem:[#allocation7 + $0x78] sm:$0xff]  ;;  %v207_v7 = vld [vmem:[#allocation7 + $0x70] sm:$0xff]  ;;  %v206_v8 = vld [vmem:[#allocation7 + $0x68] sm:$0xff] }
  0x3e   :  { %412 = vmatpush3.msra.mxu0 %v94_v1  ;;  %428 = vmatpush3.msra.mxu1 %v208_v6  ;;  %v205_v9 = vld [vmem:[#allocation7 + $0x60] sm:$0xff]  ;;  %v204_v10 = vld [vmem:[#allocation7 + $0x58] sm:$0xff]  ;;  %v203_v11 = vld [vmem:[#allocation7 + $0x50] sm:$0xff] }
  0x3f   :  { %413 = vmatprep.subr.mxu0 %v586_v0  ;;  %429 = vmatprep.subr.mxu1 %v586_v0  ;;  %v202_v12 = vld [vmem:[#allocation7 + $0x48] sm:$0xff]  ;;  %v201_v13 = vld [vmem:[#allocation7 + $0x40] sm:$0xff]  ;;  %v200_v14 = vld [vmem:[#allocation7 + $0x38] sm:$0xff] }
  0x40   :  { %414 = vmatpush3.msra.mxu0 %v93_v2  ;;  %430 = vmatpush3.msra.mxu1 %v207_v7  ;;  %v199_v15 = vld [vmem:[#allocation7 + $0x30] sm:$0xff]  ;;  %v198_v16 = vld [vmem:[#allocation7 + $0x28] sm:$0xff]  ;;  %v209_v17 = vld [vmem:[#allocation9] sm:$0xff] }
  0x41   :  { %415 = vmatprep.subr.mxu0 %v586_v0  ;;  %431 = vmatprep.subr.mxu1 %v586_v0  ;;  %v86_v18 = vld [vmem:[#allocation4] sm:$0xff]  ;;  %v197_v19 = vld [vmem:[#allocation7 + $0x20] sm:$0xff]  ;;  %v195_v21 = vld [vmem:[#allocation7 + $0x10] sm:$0xff] }
  0x42   :  { %416 = vmatpush3.msra.mxu0 %v92_v3  ;;  %432 = vmatpush3.msra.mxu1 %v206_v8  ;;  %v196_v20 = vld [vmem:[#allocation7 + $0x18] sm:$0xff]  ;;  %v194_v22 = vld [vmem:[#allocation7 + $0x8] sm:$0xff]  ;;  %v193_v23 = vld [vmem:[#allocation7] sm:$0xff] }
  0x43   :  { %417 = vmatprep.subr.mxu0 %v586_v0  ;;  %433 = vmatprep.subr.mxu1 %v586_v0  ;;  %v381_v24 = vld [vmem:[%s685_s5] ss:$0 sm:$0xff]  ;;  %v384_v51 = vld [vmem:[%s685_s5 + $0x1] ss:$0 sm:$0xff]  ;;  %v385_v55 = vld [vmem:[%s685_s5 + $0x2] ss:$0 sm:$0xff] }
  0x44   :  { %418 = vmatpush3.msra.mxu0 %v91_v4  ;;  %434 = vmatpush3.msra.mxu1 %v205_v9  ;;  %v386_v58 = vld [vmem:[%s685_s5 + $0x3] ss:$0 sm:$0xff] }
  0x45   :  { %420 = vmatmul.mubr.msk.f32.vlgmr.msra.gmra.mxu0 %vm99_vm1, %v85_v5  ;;  %422 = vmatprep.subr.mxu0 %v586_v0 }
  0x46   :  { %424 = vmatprep.mubr.msk.f32.mxu0 %vm587_vm0, %v586_v0  ;;  %435 = vmatprep.subr.mxu1 %v586_v0 }
  0x47   :  { %436 = vmatpush3.msra.mxu1 %v204_v10  ;;  %423 = vmatpush3.msra.mxu0 %v209_v17 }
  0x48   :  { %437 = vmatprep.subr.mxu1 %v586_v0 }
  0x49   :  { %438 = vmatpush3.msra.mxu1 %v203_v11  ;;  %425 = vmatmul.mubr.msk.f32.vlgmr.msra.gmra.mxu0 %vm210_vm2, %v86_v18 }
  0x4a   :  { %439 = vmatprep.subr.mxu1 %v586_v0 }
  0x4b   :  { %440 = vmatpush3.msra.mxu1 %v202_v12 }
  0x4c   :  { %441 = vmatprep.subr.mxu1 %v586_v0 }
  0x4d   :  { %442 = vmatpush3.msra.mxu1 %v201_v13 }
  0x4e   :  { %443 = vmatprep.subr.mxu1 %v586_v0 }
  0x4f   :  { %444 = vmatpush3.msra.mxu1 %v200_v14 }
  0x50   :  { %445 = vmatprep.subr.mxu1 %v586_v0 }
  0x51   :  { %446 = vmatpush3.msra.mxu1 %v199_v15 }
  0x52   :  { %447 = vmatprep.subr.mxu1 %v586_v0 }
  0x53   :  { %448 = vmatpush3.msra.mxu1 %v198_v16 }
  0x54   :  { %449 = vmatprep.subr.mxu1 %v586_v0 }
  0x55   :  { %450 = vmatpush3.msra.mxu1 %v197_v19 }
  0x56   :  { %451 = vmatprep.subr.mxu1 %v586_v0 }
  0x57   :  { %452 = vmatpush3.msra.mxu1 %v196_v20 }
  0x58   :  { %453 = vmatprep.subr.mxu1 %v586_v0 }
  0x59   :  { %454 = vmatpush3.msra.mxu1 %v195_v21 }
  0x5a   :  { %455 = vmatprep.subr.mxu1 %v586_v0 }
  0x5b   :  { %456 = vmatpush3.msra.mxu1 %v194_v22 }
  0x5c   :  { %457 = vmatprep.subr.mxu1 %v586_v0 }
  0x5d   :  { %458 = vmatpush3.msra.mxu1 %v193_v23 }
 0x105   :  { %v169_v25 = vpop.f32.mrf.mxu0 }
 0x106   :  { %v170_v26 = vadd.f32 %v381_v24, %v169_v25 }
 0x107   :  { %v421_v27 = vpop.f32.mrf.mxu0 }
 0x108   :  { %v173_v28 = vmax.f32 %v170_v26, 0.0 }
 0x109   :  { %v280_v48 = vpop.f32.mrf.mxu0 }
 0x10a   :  { %v174_v29 = vrot.slane %v173_v28, 4 }
 0x10b   :  { %v426_v49 = vpop.f32.mrf.mxu0 }
 0x10c   :  { %v175_v30 = vadd.f32 %v174_v29, %v173_v28 }
 0x10e   :  { %v176_v31 = vrot.slane %v175_v30, 2 }
 0x110   :  { %v177_v32 = vadd.f32 %v176_v31, %v175_v30 }
 0x112   :  { %v178_v33 = vrot.slane %v177_v32, 1 }
 0x114   :  { %v179_v34 = vadd.f32 %v178_v33, %v177_v32 }
 0x116   :  { %v180_v35 = vmul.f32 0.125, %v179_v34 }
 0x118   :  { %v181_v36 = vsub.f32 %v173_v28, %v180_v35 }
 0x11a   :  { %v182_v37 = vmul.f32 %v181_v36, %v181_v36 }
 0x11c   :  { %v183_v38 = vrot.slane %v182_v37, 4 }
 0x11e   :  { %v184_v39 = vadd.f32 %v183_v38, %v182_v37 }
 0x120   :  { %v185_v40 = vrot.slane %v184_v39, 2 }
 0x122   :  { %v186_v41 = vadd.f32 %v185_v40, %v184_v39 }
 0x124   :  { %v187_v42 = vrot.slane %v186_v41, 1 }
 0x126   :  { %v188_v43 = vadd.f32 %v187_v42, %v186_v41 }
 0x128   :  { %v189_v44 = vmul.f32 0.125, %v188_v43 }
 0x12a   :  { %v190_v45 = vadd.f32 1e-05, %v189_v44 }
 0x12c   :  { %471 = vrsqrt.f32 %v190_v45 }
 0x139   :  { %v472_v46 = vpop.eup %471 }
 0x13a   :  { %v192_v47 = vmul.f32 %v472_v46, %v181_v36 }
 0x13c   :  { %460 = vmatmul.mubr.f32.vlgmr.msra.gmra.mxu1 %v192_v47 }
 0x1fc   :  { %v350_v50 = vpop.f32.mrf.mxu1 }
 0x1fd   :  { %v351_v52 = vadd.f32 %v350_v50, %v280_v48 }
 0x1fe   :  { %v461_v53 = vpop.f32.mrf.mxu1 }
 0x1ff   :  { %v358_v54 = vadd.f32 %v384_v51, %v351_v52 }
 0x201   :  { %v359_v56 = vmax.f32 %v358_v54, 0.0 }
 0x203   :  { %v364_v57 = vmul.f32 %v385_v55, %v359_v56 }
 0x205   :  { %365 = vadd.xlane.f32.xlu0 %v364_v57 }
 0x28e   :  { %v366_v59 = vpop.xlane.xlu0 %365 }
 0x28f   :  { %v371_v60 = vadd.f32 %v386_v58, %v366_v59 }
 0x291   :  { %373 = vst.msk [vmem:[%s686_s6] sm:$0xff] %vm372_vm3, %v371_v60 }
 0x292   :  { %378 = vsyncpa [#allocation3], 1 }
 0x293   :  { %379 = vsyncpa [#allocation5], 1 }
 0x294   :  { %380 = vsyncpa [#allocation8], 1 }

</bundles_post_ra>
